<compile_context>
chip_gen: v5e
topology: v5e:2x2
jax: 0.10.0
libtpu: 0.0.40
codegen_flags: <defaults>
</compile_context>

<pallas_src>
import jax
import jax.numpy as jnp
from jax.experimental import pallas as pl
from jax.experimental.pallas import tpu as pltpu

M, K, N = 128, 128, 128


def mmult_kernel(a_ref, b_ref, c_ref, o_ref):
    # MXU matmul: bf16 inputs, f32 accumulation (exact for 0..99 inputs, 128-deep K)
    bb = b_ref[...].astype(jnp.bfloat16)
    cc = c_ref[...].astype(jnp.bfloat16)
    x_f32 = jnp.dot(bb, cc, preferred_element_type=jnp.float32)
    x_i32 = x_f32.astype(jnp.int32)
    # elementwise multiply with a: int32 on the VPU (must stay integer for exactness)
    o_ref[...] = a_ref[...] * x_i32


def mmult(a, b, c):
    return pl.pallas_call(
        mmult_kernel,
        out_shape=jax.ShapeDtypeStruct((M, N), jnp.int32),
        in_specs=[
            pl.BlockSpec(memory_space=pltpu.MemorySpace.VMEM),  # a
            pl.BlockSpec(memory_space=pltpu.MemorySpace.VMEM),  # b
            pl.BlockSpec(memory_space=pltpu.MemorySpace.VMEM),  # c
        ],
        out_specs=pl.BlockSpec(memory_space=pltpu.MemorySpace.VMEM),
    )(a, b, c)


if __name__ == "__main__":
    key = jax.random.PRNGKey(0)
    ka, kb, kc = jax.random.split(key, 3)
    # deterministic inputs mirroring torch.randint(100, [128, 128], dtype=int32)
    a = jax.random.randint(ka, (M, N), 0, 100, dtype=jnp.int32)
    b = jax.random.randint(kb, (M, K), 0, 100, dtype=jnp.int32)
    c = jax.random.randint(kc, (K, N), 0, 100, dtype=jnp.int32)

    y = mmult(a, b, c)
    y = jax.block_until_ready(y)

    # correctness check against pure-JAX int32 reference (values fit in int32)
    ref = a * jnp.dot(b, c, preferred_element_type=jnp.int32)
    assert y.dtype == jnp.int32
    assert bool(jnp.all(y == ref)), "mismatch vs reference"

    print("KERNEL_OK")
</pallas_src>

<mosaic_0001>
module attributes {stable_mosaic.version = 11 : i64} {
  func.func @mmult_kernel(%arg0: memref<128x128xi32, #tpu.memory_space<vmem>>, %arg1: memref<128x128xi32, #tpu.memory_space<vmem>>, %arg2: memref<128x128xi32, #tpu.memory_space<vmem>>, %arg3: memref<128x128xi32, #tpu.memory_space<vmem>>) attributes {dimension_semantics = [], scalar_prefetch = 0 : i64, scratch_operands = 0 : i64, tpu.core_type = #tpu.core_type<tc>} {
    %c0 = arith.constant 0 : index
    %c0_0 = arith.constant 0 : index
    %0 = vector.load %arg1[%c0, %c0_0] : memref<128x128xi32, #tpu.memory_space<vmem>>, vector<128x128xi32>
    %1 = arith.sitofp %0 : vector<128x128xi32> to vector<128x128xbf16>
    %c0_1 = arith.constant 0 : index
    %c0_2 = arith.constant 0 : index
    %2 = vector.load %arg2[%c0_1, %c0_2] : memref<128x128xi32, #tpu.memory_space<vmem>>, vector<128x128xi32>
    %3 = arith.sitofp %2 : vector<128x128xi32> to vector<128x128xbf16>
    %cst = arith.constant dense<0.000000e+00> : vector<128x128xf32>
    %4 = tpu.matmul %1, %3, %cst {dimension_numbers = #tpu.dot_dimension_numbers<[1], [0], [0], [1], [0, 0, 1, 1], [], []>} : vector<128x128xbf16>, vector<128x128xbf16>, vector<128x128xf32> -> vector<128x128xf32>
    %5 = arith.fptosi %4 : vector<128x128xf32> to vector<128x128xi32>
    %c0_3 = arith.constant 0 : index
    %c0_4 = arith.constant 0 : index
    %6 = vector.load %arg0[%c0_3, %c0_4] : memref<128x128xi32, #tpu.memory_space<vmem>>, vector<128x128xi32>
    %7 = arith.muli %6, %5 : vector<128x128xi32>
    %c0_5 = arith.constant 0 : index
    %c0_6 = arith.constant 0 : index
    %8 = vector.load %arg3[%c0_5, %c0_6] : memref<128x128xi32, #tpu.memory_space<vmem>>, vector<128x128xi32>
    tpu.vector_store %arg3[%c0_5, %c0_6], %7 {strides = array<i32>} : memref<128x128xi32, #tpu.memory_space<vmem>>, vector<128x128xi32>,
    return
  }
}

</mosaic_0001>

<bundles_post_ra>
// kernel: tpu_custom_call.1
= control target key start
LH: loop header
LB: loop body
LE: loop exit
PB: predicated region body
PF: predicated region fallthrough
CT: control target
= control target key end

     0   :  { %8 = vsyncpa [#allocation3], 0  ;;  %s537_s0 = inlined_call_operand.hbm [shape: s32[128,128], index: 0, kind: input, shape index: {}]   ;;  %s538_s1 = inlined_call_operand.hbm [shape: s32[128,128], index: 1, kind: input, shape index: {}]   ;;  %s539_s2 = inlined_call_operand.hbm [shape: s32[128,128], index: 2, kind: input, shape index: {}]   ;;  %s540_s3 = inlined_call_operand.hbm [shape: s32[128,128], index: 3, kind: output, shape index: {}]  }
   0x1   :  { %9 = vsyncpa [#allocation6], 0 }
   0x2   :  { %10 = vsyncpa [#allocation4], 0  ;;  %s28_s14 = sshll.u32 %s538_s1, 4  ;;  %s487_s15 = smov [#allocation5]   ;;  %s29_s14 = int_to_ptr.hbm [resolvable:$true] %s28_s14 }
   0x3   :  { %s30_s16 = sshll.u32 %s487_s15, 4  ;;  %s15_s19 = sshll.u32 %s537_s0, 4  ;;  %s31_s16 = int_to_ptr.vmem [resolvable:$true] %s30_s16  ;;  %s16_s19 = int_to_ptr.hbm [resolvable:$true] %s15_s19 }
   0x4   :  { %s488_s20 = smov 128   ;;  %s489_s21 = smov 8  }
   0x5   :  { %36 = dma.hbm_to_vmem [thread:$0]  %s29_s14, 2048, %s31_s16, [#allocation6], %s488_s20, %s488_s20, %s489_s21  }
   0x6   :  { %s490_s22 = smov [#allocation2]   ;;  %s41_s1 = sshll.u32 %s539_s2, 4  ;;  %s42_s1 = int_to_ptr.hbm [resolvable:$true] %s41_s1 }
   0x7   :  { %s17_s23 = sshll.u32 %s490_s22, 4  ;;  %s491_s0 = smov [#allocation7]   ;;  %s18_s23 = int_to_ptr.vmem [resolvable:$true] %s17_s23 }
   0x8   :  { %23 = dma.hbm_to_vmem [thread:$0]  %s16_s19, 2048, %s18_s23, [#allocation3], %s488_s20, %s488_s20, %s489_s21  }
   0x9   :  { %s43_s26 = sshll.u32 %s491_s0, 4  ;;  %s44_s26 = int_to_ptr.vmem [resolvable:$true] %s43_s26 }
   0xa   :  { %49 = dma.hbm_to_vmem [thread:$0]  %s42_s1, 2048, %s44_s26, [#allocation6], %s488_s20, %s488_s20, %s489_s21  }
   0xb   :  { %481 = dma.done.wait [#allocation3], 2048  }
   0xc   :  { %482 = vsyncadd [#allocation3], 4294965248 }
   0xd   :  { %483 = dma.done.wait [#allocation6], 4096  }
   0xe   :  { %484 = vsyncadd [#allocation6], 4294963200  ;;  %v116_v0 = vld [vmem:[#allocation7 + $0x70] sm:$0xff]  ;;  %v117_v1 = vld [vmem:[#allocation7 + $0x78] sm:$0xff]  ;;  %s492_s2 = smov [#allocation8]   ;;  %s261_s30 = sshll.u32 %s540_s3, 4  ;;  %s262_s30 = int_to_ptr.hbm [resolvable:$true] %s261_s30 }
   0xf   :  { %v114_v2 = vld [vmem:[#allocation7 + $0x60] sm:$0xff]  ;;  %v132_v3 = vcvt.s32.f32 %v116_v0  ;;  %v133_v4 = vcvt.s32.f32 %v117_v1  ;;  %v115_v5 = vld [vmem:[#allocation7 + $0x68] sm:$0xff]  ;;  %v112_v8 = vld [vmem:[#allocation7 + $0x50] sm:$0xff]  ;;  %s259_s27 = sshll.u32 %s492_s2, 4  ;;  %s260_s27 = int_to_ptr.vmem [resolvable:$true] %s259_s27 }
  0x10   :  { %v130_v6 = vcvt.s32.f32 %v114_v2  ;;  %v131_v7 = vcvt.s32.f32 %v115_v5  ;;  %v113_v9 = vld [vmem:[#allocation7 + $0x58] sm:$0xff]  ;;  %v128_v12 = vcvt.s32.f32 %v112_v8  ;;  %v110_v14 = vld [vmem:[#allocation7 + $0x40] sm:$0xff]  ;;  %v111_v15 = vld [vmem:[#allocation7 + $0x48] sm:$0xff] }
  0x11   :  { %v141_v10 = vpack.c.bf16 %v133_v4, %v132_v3  ;;  %v129_v13 = vcvt.s32.f32 %v113_v9  ;;  %v126_v17 = vcvt.s32.f32 %v110_v14  ;;  %v127_v18 = vcvt.s32.f32 %v111_v15  ;;  %v108_v19 = vld [vmem:[#allocation7 + $0x30] sm:$0xff]  ;;  %v109_v20 = vld [vmem:[#allocation7 + $0x38] sm:$0xff]  ;;  %v106_v24 = vld [vmem:[#allocation7 + $0x20] sm:$0xff] }
  0x12   :  { %v140_v11 = vpack.c.bf16 %v131_v7, %v130_v6  ;;  %v124_v22 = vcvt.s32.f32 %v108_v19  ;;  %v125_v23 = vcvt.s32.f32 %v109_v20  ;;  %v107_v25 = vld [vmem:[#allocation7 + $0x28] sm:$0xff]  ;;  %v122_v27 = vcvt.s32.f32 %v106_v24  ;;  %v104_v29 = vld [vmem:[#allocation7 + $0x10] sm:$0xff]  ;;  %v105_v30 = vld [vmem:[#allocation7 + $0x18] sm:$0xff] }
  0x13   :  { %142 = vmatpush.bf16.msra.mxu0 %v141_v10  ;;  %275 = vmatpush.bf16.msra.mxu1 %v141_v10  ;;  %v139_v16 = vpack.c.bf16 %v129_v13, %v128_v12  ;;  %v138_v21 = vpack.c.bf16 %v127_v18, %v126_v17  ;;  %v123_v28 = vcvt.s32.f32 %v107_v25  ;;  %v120_v32 = vcvt.s32.f32 %v104_v29  ;;  %v102_v34 = vld [vmem:[#allocation7] sm:$0xff]  ;;  %v103_v35 = vld [vmem:[#allocation7 + $0x8] sm:$0xff]  ;;  %v64_v60 = vld [vmem:[#allocation5 + $0x10] sm:$0xff] }
  0x14   :  { %276 = vmatpush.bf16.msra.mxu2 %v141_v10  ;;  %277 = vmatpush.bf16.msra.mxu3 %v141_v10  ;;  %v137_v26 = vpack.c.bf16 %v125_v23, %v124_v22  ;;  %v121_v33 = vcvt.s32.f32 %v105_v30  ;;  %v118_v36 = vcvt.s32.f32 %v102_v34  ;;  %v119_v37 = vcvt.s32.f32 %v103_v35  ;;  %v62_v38 = vld [vmem:[#allocation5] sm:$0xff]  ;;  %v63_v39 = vld [vmem:[#allocation5 + $0x8] sm:$0xff]  ;;  %v65_v61 = vld [vmem:[#allocation5 + $0x18] sm:$0xff] }
  0x15   :  { %v136_v31 = vpack.c.bf16 %v123_v28, %v122_v27  ;;  %v66_v41 = vld [vmem:[#allocation5 + $0x20] sm:$0xff]  ;;  %v67_v42 = vld [vmem:[#allocation5 + $0x28] sm:$0xff]  ;;  %v78_v47 = vcvt.s32.f32 %v62_v38  ;;  %v79_v49 = vcvt.s32.f32 %v63_v39  ;;  %v68_v62 = vld [vmem:[#allocation5 + $0x30] sm:$0xff]  ;;  %v80_v4 = vcvt.s32.f32 %v64_v60 }
  0x16   :  { %v135_v40 = vpack.c.bf16 %v121_v33, %v120_v32  ;;  %v70_v43 = vld [vmem:[#allocation5 + $0x40] sm:$0xff]  ;;  %v71_v44 = vld [vmem:[#allocation5 + $0x48] sm:$0xff]  ;;  %v134_v48 = vpack.c.bf16 %v119_v37, %v118_v36  ;;  %v82_v50 = vcvt.s32.f32 %v66_v41  ;;  %v83_v51 = vcvt.s32.f32 %v67_v42  ;;  %v69_v63 = vld [vmem:[#allocation5 + $0x38] sm:$0xff] }
  0x17   :  { %143 = vmatpush.bf16.msra.mxu0 %v140_v11  ;;  %278 = vmatpush.bf16.msra.mxu1 %v140_v11  ;;  %v74_v45 = vld [vmem:[#allocation5 + $0x60] sm:$0xff]  ;;  %v75_v46 = vld [vmem:[#allocation5 + $0x68] sm:$0xff]  ;;  %v86_v52 = vcvt.s32.f32 %v70_v43  ;;  %v87_v53 = vcvt.s32.f32 %v71_v44  ;;  %v94_v56 = vpack.c.bf16 %v79_v49, %v78_v47  ;;  %v72_v0 = vld [vmem:[#allocation5 + $0x50] sm:$0xff]  ;;  %v81_v5 = vcvt.s32.f32 %v65_v61 }
  0x18   :  { %279 = vmatpush.bf16.msra.mxu2 %v140_v11  ;;  %280 = vmatpush.bf16.msra.mxu3 %v140_v11  ;;  %v90_v54 = vcvt.s32.f32 %v74_v45  ;;  %v91_v55 = vcvt.s32.f32 %v75_v46  ;;  %v96_v57 = vpack.c.bf16 %v83_v51, %v82_v50  ;;  %v73_v1 = vld [vmem:[#allocation5 + $0x58] sm:$0xff]  ;;  %v76_v2 = vld [vmem:[#allocation5 + $0x70] sm:$0xff]  ;;  %v84_v6 = vcvt.s32.f32 %v68_v62  ;;  %v207_v23 = vld [vmem:[#allocation2] sm:$0xff] }
  0x19   :  { %v98_v58 = vpack.c.bf16 %v87_v53, %v86_v52  ;;  %v77_v3 = vld [vmem:[#allocation5 + $0x78] sm:$0xff]  ;;  %v85_v7 = vcvt.s32.f32 %v69_v63  ;;  %v88_v8 = vcvt.s32.f32 %v72_v0  ;;  %v89_v9 = vcvt.s32.f32 %v73_v1  ;;  %v219_v45 = vld [vmem:[#allocation2 + $0x60] sm:$0xff]  ;;  %v208_v49 = vld [vmem:[#allocation2 + $0x8] sm:$0xff] }
  0x1a   :  { %v100_v59 = vpack.c.bf16 %v91_v55, %v90_v54  ;;  %v92_v10 = vcvt.s32.f32 %v76_v2  ;;  %v93_v11 = vcvt.s32.f32 %v77_v3  ;;  %v95_v12 = vpack.c.bf16 %v81_v5, %v80_v4  ;;  %v212_v53 = vld [vmem:[#allocation2 + $0x28] sm:$0xff] }
  0x1b   :  { %144 = vmatpush.bf16.msra.mxu0 %v139_v16  ;;  %281 = vmatpush.bf16.msra.mxu1 %v139_v16  ;;  %v97_v13 = vpack.c.bf16 %v85_v7, %v84_v6  ;;  %v99_v14 = vpack.c.bf16 %v89_v9, %v88_v8  ;;  %v216_v3 = vld [vmem:[#allocation2 + $0x48] sm:$0xff] }
  0x1c   :  { %282 = vmatpush.bf16.msra.mxu2 %v139_v16  ;;  %283 = vmatpush.bf16.msra.mxu3 %v139_v16  ;;  %v101_v15 = vpack.c.bf16 %v93_v11, %v92_v10  ;;  %v220_v8 = vld [vmem:[#allocation2 + $0x68] sm:$0xff] }
  0x1f   :  { %145 = vmatpush.bf16.msra.mxu0 %v138_v21  ;;  %284 = vmatpush.bf16.msra.mxu1 %v138_v21 }
  0x20   :  { %285 = vmatpush.bf16.msra.mxu2 %v138_v21  ;;  %286 = vmatpush.bf16.msra.mxu3 %v138_v21 }
  0x23   :  { %146 = vmatpush.bf16.msra.mxu0 %v137_v26  ;;  %287 = vmatpush.bf16.msra.mxu1 %v137_v26 }
  0x24   :  { %288 = vmatpush.bf16.msra.mxu2 %v137_v26  ;;  %289 = vmatpush.bf16.msra.mxu3 %v137_v26  ;;  %v211_v26 = vld [vmem:[#allocation2 + $0x20] sm:$0xff] }
  0x27   :  { %147 = vmatpush.bf16.msra.mxu0 %v136_v31  ;;  %290 = vmatpush.bf16.msra.mxu1 %v136_v31 }
  0x28   :  { %291 = vmatpush.bf16.msra.mxu2 %v136_v31  ;;  %292 = vmatpush.bf16.msra.mxu3 %v136_v31 }
  0x2b   :  { %148 = vmatpush.bf16.msra.mxu0 %v135_v40  ;;  %293 = vmatpush.bf16.msra.mxu1 %v135_v40 }
  0x2c   :  { %294 = vmatpush.bf16.msra.mxu2 %v135_v40  ;;  %295 = vmatpush.bf16.msra.mxu3 %v135_v40  ;;  %v215_v40 = vld [vmem:[#allocation2 + $0x40] sm:$0xff] }
  0x2f   :  { %149 = vmatpush.bf16.msra.mxu0 %v134_v48  ;;  %296 = vmatpush.bf16.msra.mxu1 %v134_v48 }
  0x30   :  { %297 = vmatpush.bf16.msra.mxu2 %v134_v48  ;;  %298 = vmatpush.bf16.msra.mxu3 %v134_v48 }
  0x32   :  { %150 = vmatmul.bf16.vlgmr.msra.gmra.mxu0 %v94_v56  ;;  %160 = vmatmul.bf16.vlgmr.msra.gmra.mxu1 %v96_v57 }
  0x33   :  { %170 = vmatmul.bf16.vlgmr.msra.gmra.mxu2 %v98_v58  ;;  %180 = vmatmul.bf16.vlgmr.msra.gmra.mxu3 %v100_v59 }
  0x42   :  { %155 = vmatmul.bf16.gmra.mxu0 %v95_v12  ;;  %165 = vmatmul.bf16.gmra.mxu1 %v97_v13  ;;  %v209_v13 = vld [vmem:[#allocation2 + $0x10] sm:$0xff] }
  0x43   :  { %175 = vmatmul.bf16.gmra.mxu2 %v99_v14  ;;  %185 = vmatmul.bf16.gmra.mxu3 %v101_v15 }
  0xaf   :  { %v151_v16 = vpop.f32.mrf.mxu0  ;;  %v161_v17 = vpop.f32.mrf.mxu1 }
  0xb0   :  { %vm299_vm0 = vcmp.lt.s32.totalorder %v151_v16, 0  ;;  %v300_v18 = vceil.f32 %v151_v16  ;;  %v301_v19 = vfloor.f32 %v151_v16  ;;  %vm319_vm1 = vcmp.lt.s32.totalorder %v161_v17, 0 }
  0xb1   :  { %v320_v20 = vceil.f32 %v161_v17  ;;  %v321_v21 = vfloor.f32 %v161_v17  ;;  %v213_v17 = vld [vmem:[#allocation2 + $0x30] sm:$0xff] }
  0xb2   :  { %v302_v22 = vsel %vm299_vm0, %v300_v18, %v301_v19 }
  0xb3   :  { %v303_v24 = vcvt.f32.s32 %v302_v22  ;;  %v322_v25 = vsel %vm319_vm1, %v320_v20, %v321_v21 }
  0xb4   :  { %v323_v27 = vcvt.f32.s32 %v322_v25 }
  0xb5   :  { %v223_v28 = vmul.u32 %v303_v24, %v207_v23 }
  0xb6   :  { %v227_v29 = vmul.u32 %v323_v27, %v211_v26  ;;  %v171_v30 = vpop.f32.mrf.mxu2  ;;  %v181_v31 = vpop.f32.mrf.mxu3 }
  0xb7   :  { %239 = vst [vmem:[#allocation8] sm:$0xff] %v223_v28  ;;  %vm339_vm2 = vcmp.lt.s32.totalorder %v171_v30, 0  ;;  %v340_v32 = vceil.f32 %v171_v30  ;;  %v341_v33 = vfloor.f32 %v171_v30  ;;  %vm359_vm3 = vcmp.lt.s32.totalorder %v181_v31, 0  ;;  %v153_v34 = vpop.f32.mrf.mxu0  ;;  %v163_v35 = vpop.f32.mrf.mxu1 }
  0xb8   :  { %243 = vst [vmem:[#allocation8 + $0x20] sm:$0xff] %v227_v29  ;;  %v360_v36 = vceil.f32 %v181_v31  ;;  %v361_v37 = vfloor.f32 %v181_v31  ;;  %vm304_vm4 = vcmp.lt.s32.totalorder %v153_v34, 0  ;;  %v305_v38 = vceil.f32 %v153_v34  ;;  %v217_v31 = vld [vmem:[#allocation2 + $0x50] sm:$0xff] }
  0xb9   :  { %v342_v39 = vsel %vm339_vm2, %v340_v32, %v341_v33  ;;  %v306_v41 = vfloor.f32 %v153_v34  ;;  %vm324_vm5 = vcmp.lt.s32.totalorder %v163_v35, 0  ;;  %v325_v42 = vceil.f32 %v163_v35 }
  0xba   :  { %v343_v43 = vcvt.f32.s32 %v342_v39  ;;  %v362_v44 = vsel %vm359_vm3, %v360_v36, %v361_v37  ;;  %v326_v46 = vfloor.f32 %v163_v35  ;;  %v221_v36 = vld [vmem:[#allocation2 + $0x70] sm:$0xff] }
  0xbb   :  { %v363_v47 = vcvt.f32.s32 %v362_v44  ;;  %v307_v48 = vsel %vm304_vm4, %v305_v38, %v306_v41  ;;  %v210_v41 = vld [vmem:[#allocation2 + $0x18] sm:$0xff] }
  0xbc   :  { %v231_v50 = vmul.u32 %v343_v43, %v215_v40  ;;  %v308_v51 = vcvt.f32.s32 %v307_v48  ;;  %v327_v52 = vsel %vm324_vm5, %v325_v42, %v326_v46 }
  0xbd   :  { %v235_v54 = vmul.u32 %v363_v47, %v219_v45  ;;  %v328_v55 = vcvt.f32.s32 %v327_v52  ;;  %v214_v45 = vld [vmem:[#allocation2 + $0x38] sm:$0xff] }
  0xbe   :  { %247 = vst [vmem:[#allocation8 + $0x40] sm:$0xff] %v231_v50  ;;  %v224_v56 = vmul.u32 %v308_v51, %v208_v49  ;;  %v173_v57 = vpop.f32.mrf.mxu2  ;;  %v183_v58 = vpop.f32.mrf.mxu3 }
  0xbf   :  { %251 = vst [vmem:[#allocation8 + $0x60] sm:$0xff] %v235_v54  ;;  %v228_v59 = vmul.u32 %v328_v55, %v212_v53  ;;  %vm344_vm6 = vcmp.lt.s32.totalorder %v173_v57, 0  ;;  %v345_v60 = vceil.f32 %v173_v57  ;;  %v346_v61 = vfloor.f32 %v173_v57  ;;  %v156_v62 = vpop.f32.mrf.mxu0  ;;  %v166_v63 = vpop.f32.mrf.mxu1  ;;  %v218_v57 = vld [vmem:[#allocation2 + $0x58] sm:$0xff] }
  0xc0   :  { %240 = vst [vmem:[#allocation8 + $0x8] sm:$0xff] %v224_v56  ;;  %vm364_vm7 = vcmp.lt.s32.totalorder %v183_v58, 0  ;;  %v365_v0 = vceil.f32 %v183_v58  ;;  %v366_v1 = vfloor.f32 %v183_v58  ;;  %vm309_vm8 = vcmp.lt.s32.totalorder %v156_v62, 0 }
  0xc1   :  { %244 = vst [vmem:[#allocation8 + $0x28] sm:$0xff] %v228_v59  ;;  %v347_v2 = vsel %vm344_vm6, %v345_v60, %v346_v61  ;;  %v310_v4 = vceil.f32 %v156_v62  ;;  %v311_v5 = vfloor.f32 %v156_v62  ;;  %vm329_vm9 = vcmp.lt.s32.totalorder %v166_v63, 0  ;;  %v222_v60 = vld [vmem:[#allocation2 + $0x78] sm:$0xff] }
  0xc2   :  { %v348_v6 = vcvt.f32.s32 %v347_v2  ;;  %v367_v7 = vsel %vm364_vm7, %v365_v0, %v366_v1  ;;  %v330_v9 = vceil.f32 %v166_v63  ;;  %v331_v10 = vfloor.f32 %v166_v63 }
  0xc3   :  { %v368_v11 = vcvt.f32.s32 %v367_v7  ;;  %v312_v12 = vsel %vm309_vm8, %v310_v4, %v311_v5 }
  0xc4   :  { %v232_v14 = vmul.u32 %v348_v6, %v216_v3  ;;  %v313_v15 = vcvt.f32.s32 %v312_v12  ;;  %v332_v16 = vsel %vm329_vm9, %v330_v9, %v331_v10 }
  0xc5   :  { %v236_v18 = vmul.u32 %v368_v11, %v220_v8  ;;  %v333_v19 = vcvt.f32.s32 %v332_v16 }
  0xc6   :  { %248 = vst [vmem:[#allocation8 + $0x48] sm:$0xff] %v232_v14  ;;  %v225_v20 = vmul.u32 %v313_v15, %v209_v13  ;;  %v176_v21 = vpop.f32.mrf.mxu2  ;;  %v186_v22 = vpop.f32.mrf.mxu3 }
  0xc7   :  { %252 = vst [vmem:[#allocation8 + $0x68] sm:$0xff] %v236_v18  ;;  %v229_v23 = vmul.u32 %v333_v19, %v213_v17  ;;  %vm349_vm10 = vcmp.lt.s32.totalorder %v176_v21, 0  ;;  %v350_v24 = vceil.f32 %v176_v21  ;;  %v351_v25 = vfloor.f32 %v176_v21  ;;  %v158_v26 = vpop.f32.mrf.mxu0  ;;  %v168_v27 = vpop.f32.mrf.mxu1 }
  0xc8   :  { %241 = vst [vmem:[#allocation8 + $0x10] sm:$0xff] %v225_v20  ;;  %vm369_vm11 = vcmp.lt.s32.totalorder %v186_v22, 0  ;;  %v370_v28 = vceil.f32 %v186_v22  ;;  %v371_v29 = vfloor.f32 %v186_v22  ;;  %vm314_vm12 = vcmp.lt.s32.totalorder %v158_v26, 0 }
  0xc9   :  { %245 = vst [vmem:[#allocation8 + $0x30] sm:$0xff] %v229_v23  ;;  %v352_v30 = vsel %vm349_vm10, %v350_v24, %v351_v25  ;;  %v315_v32 = vceil.f32 %v158_v26  ;;  %v316_v33 = vfloor.f32 %v158_v26  ;;  %vm334_vm13 = vcmp.lt.s32.totalorder %v168_v27, 0 }
  0xca   :  { %v353_v34 = vcvt.f32.s32 %v352_v30  ;;  %v372_v35 = vsel %vm369_vm11, %v370_v28, %v371_v29  ;;  %v335_v37 = vceil.f32 %v168_v27  ;;  %v336_v38 = vfloor.f32 %v168_v27 }
  0xcb   :  { %v373_v39 = vcvt.f32.s32 %v372_v35  ;;  %v317_v40 = vsel %vm314_vm12, %v315_v32, %v316_v33 }
  0xcc   :  { %v233_v42 = vmul.u32 %v353_v34, %v217_v31  ;;  %v318_v43 = vcvt.f32.s32 %v317_v40  ;;  %v337_v44 = vsel %vm334_vm13, %v335_v37, %v336_v38 }
  0xcd   :  { %v237_v46 = vmul.u32 %v373_v39, %v221_v36  ;;  %v338_v47 = vcvt.f32.s32 %v337_v44 }
  0xce   :  { %249 = vst [vmem:[#allocation8 + $0x50] sm:$0xff] %v233_v42  ;;  %v226_v48 = vmul.u32 %v318_v43, %v210_v41  ;;  %v178_v49 = vpop.f32.mrf.mxu2  ;;  %v188_v50 = vpop.f32.mrf.mxu3 }
  0xcf   :  { %253 = vst [vmem:[#allocation8 + $0x70] sm:$0xff] %v237_v46  ;;  %v230_v51 = vmul.u32 %v338_v47, %v214_v45  ;;  %vm354_vm14 = vcmp.lt.s32.totalorder %v178_v49, 0  ;;  %v355_v52 = vceil.f32 %v178_v49  ;;  %v356_v53 = vfloor.f32 %v178_v49 }
  0xd0   :  { %242 = vst [vmem:[#allocation8 + $0x18] sm:$0xff] %v226_v48  ;;  %vm374_vm15 = vcmp.lt.s32.totalorder %v188_v50, 0  ;;  %v375_v54 = vceil.f32 %v188_v50  ;;  %v376_v55 = vfloor.f32 %v188_v50 }
  0xd1   :  { %246 = vst [vmem:[#allocation8 + $0x38] sm:$0xff] %v230_v51  ;;  %v357_v56 = vsel %vm354_vm14, %v355_v52, %v356_v53 }
  0xd2   :  { %v358_v58 = vcvt.f32.s32 %v357_v56  ;;  %v377_v59 = vsel %vm374_vm15, %v375_v54, %v376_v55 }
  0xd3   :  { %v378_v61 = vcvt.f32.s32 %v377_v59 }
  0xd4   :  { %v234_v62 = vmul.u32 %v358_v58, %v218_v57 }
  0xd5   :  { %v238_v63 = vmul.u32 %v378_v61, %v222_v60 }
  0xd6   :  { %250 = vst [vmem:[#allocation8 + $0x58] sm:$0xff] %v234_v62 }
  0xd7   :  { %254 = vst [vmem:[#allocation8 + $0x78] sm:$0xff] %v238_v63 }
  0xd8   :  { %267 = dma.vmem_to_hbm [thread:$0]  %s260_s27, 2048, %s262_s30, [#allocation4], %s488_s20, %s488_s20, %s489_s21  }
  0xd9   :  { %485 = dma.done.wait [#allocation4], 2048  }
  0xda   :  { %486 = vsyncadd [#allocation4], 4294965248 }
  0xdb   :  { %272 = vsyncpa [#allocation3], 1 }
  0xdc   :  { %273 = vsyncpa [#allocation6], 1 }
  0xdd   :  { %274 = vsyncpa [#allocation4], 1 }

</bundles_post_ra>
